<compile_context>
chip_gen: v5e
topology: v5e:2x2
jax: 0.10.0
libtpu: 0.0.40
codegen_flags: <defaults>
</compile_context>

<pallas_src>
import math
import functools

import jax
import jax.numpy as jnp
from jax import lax
from jax.experimental import pallas as pl
from jax.experimental.pallas import tpu as pltpu


def _round_up(a, b):
    return (a + b - 1) // b * b


def _vmem_info():
    """Returns (physical VMEM bytes, per-kernel working-set budget).

    Generation-aware: ~25 MiB budget on v7x (64 MiB physical VMEM),
    up to 48 MiB on v5e/v6e (128 MiB physical)."""
    try:
        cap = int(pltpu.get_tpu_info().vmem_capacity_bytes)
    except Exception:  # no device info available (e.g. interpret mode)
        cap = 64 << 20
    budget = min(cap * 2 // 5, 48 << 20)
    return cap, budget


def _arcmargin_kernel(x_ref, w_ref, lab_ref, out_ref, *,
                      s, cos_m, sin_m, th, mm, easy_margin, tn):
    # cosine tile (tm, tn): contract x(tm, D) against w(tn, D) on the last dim
    # (MXU-native, no in-kernel transpose/relayout), f32 accumulation.
    cosine = lax.dot_general(
        x_ref[...], w_ref[...],
        dimension_numbers=(((1,), (1,)), ((), ())),
        preferred_element_type=jnp.float32)

    # sine = sqrt(max(1 - c^2, 0)); the upper clamp of the PyTorch .clamp(0,1)
    # is mathematically redundant (1 - c^2 <= 1), so it is dropped.
    sine = jnp.sqrt(jnp.maximum(1.0 - cosine * cosine, 0.0))
    phi = cosine * cos_m - sine * sin_m
    if easy_margin:
        phi = jnp.where(cosine > 0.0, phi, cosine)
    else:
        phi = jnp.where(cosine > th, phi, cosine - mm)

    # one_hot.scatter_(1, label, 1) fused as a single select: compare a
    # TILE-LOCAL column iota (loop-invariant, hoistable) against the label
    # shifted by this N-tile's origin.
    col = lax.broadcasted_iota(jnp.int32, cosine.shape, 1)
    lab_local = lab_ref[...] - pl.program_id(0) * tn          # (tm, 1) int32
    out = jnp.where(col == lab_local, phi, cosine) * s
    out_ref[...] = out.astype(out_ref.dtype)


def arc_margin_product(x, weight, label, *, s=30.0, m=0.5, easy_margin=False,
                       compute_dtype=jnp.bfloat16, out_dtype=jnp.float32,
                       tm=None, tn=None):
    """Pallas implementation of ArcMarginProduct.forward.

    x:      (B, in_features) float32
    weight: (out_features, in_features) float32
    label:  (B,) int  -- class index per row
    returns (B, out_features) out_dtype (float32 by default)

    compute_dtype=jnp.float32 is the documented escape hatch if bf16 cosine
    rounding (~4e-3, i.e. ~0.1 on the s-scaled logits) is not acceptable.
    """
    B, D = x.shape
    N, D2 = weight.shape
    assert D == D2

    cbytes = jnp.dtype(compute_dtype).itemsize
    obytes = jnp.dtype(out_dtype).itemsize

    # ---- hoisted prologue (plain XLA, runs once -- not per grid tile) ------
    # F.normalize(v, dim=1) == v * rsqrt(max(||v||^2, 1e-24)).
    # W stays (N, D): no transpose materialization; normalize + cast (+ pad)
    # fuse into one producer pass over W.
    x_n = (x * lax.rsqrt(jnp.maximum(jnp.sum(x * x, axis=-1, keepdims=True),
                                     1e-24))).astype(compute_dtype)
    w_n = (weight * lax.rsqrt(jnp.maximum(
        jnp.sum(weight * weight, axis=-1, keepdims=True), 1e-24))
    ).astype(compute_dtype)
    # TODO(synk): for the single-B-tile case, fusing W row-normalization into
    # the kernel would also remove this one extra pass over W.

    vmem_cap, budget = _vmem_info()

    # ---- tile sizes: lane-dense multiples of 128 on N, bf16 sublane 16 on B -
    if tm is None:
        align = 16 if cbytes == 2 else 8
        tm = min(256, _round_up(B, align))
    if tn is None:
        tn = min(1024, _round_up(N, 128))

    def _working_set(tn_):
        # double-buffered x + W tiles + output tile (labels are negligible).
        return 2 * (tm * D * cbytes + tn_ * D * cbytes + tm * tn_ * obytes)

    while tn > 128 and _working_set(tn) > budget:
        tn //= 2

    Bp = _round_up(B, tm)
    Np = _round_up(N, tn)

    # zero-pad to tile multiples; padding is stripped after the call.
    if Bp != B:
        x_n = jnp.pad(x_n, ((0, Bp - B), (0, 0)))
    if Np != N:
        w_n = jnp.pad(w_n, ((0, Np - N), (0, 0)))
    lab2d = jnp.pad(label.astype(jnp.int32).reshape(B, 1),
                    ((0, Bp - B), (0, 0)), constant_values=-1)

    kernel = functools.partial(
        _arcmargin_kernel,
        s=float(s),
        cos_m=math.cos(m),
        sin_m=math.sin(m),
        th=math.cos(math.pi - m),
        mm=math.sin(math.pi - m) * m,
        easy_margin=easy_margin,
        tn=tn,
    )

    # Grid: N-tiles OUTER (axis 0), B-tiles INNER (axis 1).  W's block index
    # is constant across the inner axis -> streamed from HBM exactly once.
    grid = (Np // tn, Bp // tm)

    vmem_limit = int(max(32 << 20,
                         min(vmem_cap * 9 // 10, _working_set(tn) + (8 << 20))))

    cost = pl.CostEstimate(
        flops=2 * Bp * Np * D,
        transcendentals=0,
        bytes_accessed=int(Bp * D * cbytes + Np * D * cbytes + Bp * Np * obytes),
    )

    out = pl.pallas_call(
        kernel,
        out_shape=jax.ShapeDtypeStruct((Bp, Np), out_dtype),
        grid_spec=pltpu.PrefetchScalarGridSpec(
            num_scalar_prefetch=0,
            grid=grid,
            in_specs=[
                pl.BlockSpec((tm, D), lambda j, i: (i, 0)),   # x tile (cycles)
                pl.BlockSpec((tn, D), lambda j, i: (j, 0)),   # W tile (resident over i)
                pl.BlockSpec((tm, 1), lambda j, i: (i, 0)),   # labels for this B-tile
            ],
            out_specs=pl.BlockSpec((tm, tn), lambda j, i: (i, j)),
        ),
        compiler_params=pltpu.CompilerParams(
            # N axis (leading) parallel -> v7x megacore shards the W stream;
            # B axis arbitrary keeps the W tile resident across the inner loop.
            dimension_semantics=("parallel", "arbitrary"),
            vmem_limit_bytes=vmem_limit,
        ),
        cost_estimate=cost,
    )(x_n, w_n, lab2d)

    return out[:B, :N]


def _reference(x, weight, label, *, s=30.0, m=0.5, easy_margin=False,
               compute_dtype=jnp.float32):
    """Pure-JAX reference replicating the PyTorch forward.  compute_dtype lets
    the test also compare bit-for-bit-ish against a bf16-rounded cosine."""
    cos_m, sin_m = math.cos(m), math.sin(m)
    th, mm = math.cos(math.pi - m), math.sin(math.pi - m) * m
    x_n = x / jnp.maximum(jnp.linalg.norm(x, axis=1, keepdims=True), 1e-12)
    w_n = weight / jnp.maximum(jnp.linalg.norm(weight, axis=1, keepdims=True), 1e-12)
    x_n = x_n.astype(compute_dtype).astype(jnp.float32)
    w_n = w_n.astype(compute_dtype).astype(jnp.float32)
    cosine = x_n @ w_n.T
    sine = jnp.sqrt(jnp.clip(1.0 - cosine ** 2, 0.0, 1.0))
    phi = cosine * cos_m - sine * sin_m
    if easy_margin:
        phi = jnp.where(cosine > 0.0, phi, cosine)
    else:
        phi = jnp.where(cosine > th, phi, cosine - mm)
    one_hot = jax.nn.one_hot(label, cosine.shape[1], dtype=cosine.dtype)
    return (one_hot * phi + (1.0 - one_hot) * cosine) * s


if __name__ == "__main__":
    # Small but multi-tile shapes: tm=16, tn=128 gives a (2, 2) grid (N-tiles
    # outer, B-tiles inner), exercising W residency across the inner B axis,
    # the tile-local label offset on the N axis, and padding on both axes
    # (B 24->32, N 200->256).
    B, in_features, out_features = 24, 32, 200

    key = jax.random.PRNGKey(0)
    kx, kw, kl = jax.random.split(key, 3)

    x = jax.random.normal(kx, (B, in_features), dtype=jnp.float32)
    # xavier_uniform_ init for weight (out_features, in_features)
    limit = math.sqrt(6.0 / (in_features + out_features))
    weight = jax.random.uniform(kw, (out_features, in_features),
                                minval=-limit, maxval=limit, dtype=jnp.float32)
    label = jax.random.randint(kl, (B,), 0, out_features, dtype=jnp.int32)

    ok = True
    for easy in (False, True):
        out = arc_margin_product(x, weight, label, s=30.0, m=0.5,
                                 easy_margin=easy, tm=16, tn=128)
        out = jax.block_until_ready(out)
        assert out.shape == (B, out_features)

        # Tight check against a reference using the same bf16-rounded operands
        # (isolates kernel logic from bf16 cast error)...
        ref_bf16 = _reference(x, weight, label, s=30.0, m=0.5, easy_margin=easy,
                              compute_dtype=jnp.bfloat16)
        ok &= bool(jnp.allclose(out, ref_bf16, atol=2e-2, rtol=1e-3))

        # ...and a loose check against the exact f32 PyTorch-equivalent path
        # (bf16 cosine rounding * s=30 bounds the absolute error).
        ref_f32 = _reference(x, weight, label, s=30.0, m=0.5, easy_margin=easy)
        ok &= bool(jnp.allclose(out, ref_f32, atol=0.25, rtol=0.02))

    assert ok, "mismatch vs reference"
    print("KERNEL_OK")
</pallas_src>

<mosaic_0001>
module attributes {stable_mosaic.version = 11 : i64} {
  func.func @_arcmargin_kernel(%arg0: i32, %arg1: i32, %arg2: memref<16x32xbf16, #tpu.memory_space<vmem>>, %arg3: memref<128x32xbf16, #tpu.memory_space<vmem>>, %arg4: memref<16x1xi32, #tpu.memory_space<vmem>>, %arg5: memref<16x128xf32, #tpu.memory_space<vmem>>) attributes {dimension_semantics = [#tpu.dimension_semantics<parallel>, #tpu.dimension_semantics<arbitrary>], iteration_bounds = array<i64: 2, 2>, scalar_prefetch = 0 : i64, scratch_operands = 0 : i64, tpu.core_type = #tpu.core_type<tc>, window_params = [{transform_indices = @transform_0, window_bounds = array<i64: 16, 32>}, {transform_indices = @transform_1, window_bounds = array<i64: 128, 32>}, {transform_indices = @transform_2, window_bounds = array<i64: 16, 1>}, {transform_indices = @transform_3, window_bounds = array<i64: 16, 128>}]} {
    %c0 = arith.constant 0 : index
    %c0_0 = arith.constant 0 : index
    %0 = vector.load %arg2[%c0, %c0_0] : memref<16x32xbf16, #tpu.memory_space<vmem>>, vector<16x32xbf16>
    %c0_1 = arith.constant 0 : index
    %c0_2 = arith.constant 0 : index
    %1 = vector.load %arg3[%c0_1, %c0_2] : memref<128x32xbf16, #tpu.memory_space<vmem>>, vector<128x32xbf16>
    %cst = arith.constant dense<0.000000e+00> : vector<16x128xf32>
    %2 = tpu.matmul %0, %1, %cst {dimension_numbers = #tpu.dot_dimension_numbers<[1], [1], [0], [0], [0, 0, 1, 0], [], []>} : vector<16x32xbf16>, vector<128x32xbf16>, vector<16x128xf32> -> vector<16x128xf32>
    %3 = arith.mulf %2, %2 : vector<16x128xf32>
    %cst_3 = arith.constant 1.000000e+00 : f32
    %4 = vector.broadcast %cst_3 : f32 to vector<16x128xf32>
    %5 = arith.subf %4, %3 : vector<16x128xf32>
    %cst_4 = arith.constant 0.000000e+00 : f32
    %6 = vector.broadcast %cst_4 : f32 to vector<16x128xf32>
    %7 = arith.maximumf %5, %6 : vector<16x128xf32>
    %8 = math.sqrt %7 : vector<16x128xf32>
    %cst_5 = arith.constant 0.87758255 : f32
    %9 = vector.broadcast %cst_5 : f32 to vector<16x128xf32>
    %10 = arith.mulf %2, %9 : vector<16x128xf32>
    %cst_6 = arith.constant 0.47942555 : f32
    %11 = vector.broadcast %cst_6 : f32 to vector<16x128xf32>
    %12 = arith.mulf %8, %11 : vector<16x128xf32>
    %13 = arith.subf %10, %12 : vector<16x128xf32>
    %cst_7 = arith.constant -0.87758255 : f32
    %14 = vector.broadcast %cst_7 : f32 to vector<16x128xf32>
    %15 = arith.cmpf ogt, %2, %14 : vector<16x128xf32>
    %cst_8 = arith.constant 0.239712775 : f32
    %16 = vector.broadcast %cst_8 : f32 to vector<16x128xf32>
    %17 = arith.subf %2, %16 : vector<16x128xf32>
    %18 = arith.select %15, %13, %17 : vector<16x128xi1>, vector<16x128xf32>
    %19 = tpu.iota {dimensions = array<i32: 1>} : vector<16x128xi32>
    %c0_9 = arith.constant 0 : index
    %c0_10 = arith.constant 0 : index
    %20 = vector.load %arg4[%c0_9, %c0_10] : memref<16x1xi32, #tpu.memory_space<vmem>>, vector<16x1xi32>
    %c128_i32 = arith.constant 128 : i32
    %21 = arith.muli %arg0, %c128_i32 : i32
    %22 = vector.broadcast %21 : i32 to vector<16x1xi32>
    %23 = arith.subi %20, %22 : vector<16x1xi32>
    %24 = vector.broadcast %23 : vector<16x1xi32> to vector<16x128xi32>
    %25 = arith.cmpi eq, %19, %24 : vector<16x128xi32>
    %26 = arith.select %25, %18, %2 : vector<16x128xi1>, vector<16x128xf32>
    %cst_11 = arith.constant 3.000000e+01 : f32
    %27 = vector.broadcast %cst_11 : f32 to vector<16x128xf32>
    %28 = arith.mulf %26, %27 : vector<16x128xf32>
    %c0_12 = arith.constant 0 : index
    %c0_13 = arith.constant 0 : index
    %29 = vector.load %arg5[%c0_12, %c0_13] : memref<16x128xf32, #tpu.memory_space<vmem>>, vector<16x128xf32>
    tpu.vector_store %arg5[%c0_12, %c0_13], %28 {strides = array<i32>} : memref<16x128xf32, #tpu.memory_space<vmem>>, vector<16x128xf32>,
    return
  }
  func.func @transform_0(%arg0: i32, %arg1: i32) -> (i32, i32) {
    %c0_i32 = arith.constant 0 : i32
    %c0_i32_0 = arith.constant 0 : i32
    return %arg1, %c0_i32 : i32, i32
  }
  func.func @transform_1(%arg0: i32, %arg1: i32) -> (i32, i32) {
    %c0_i32 = arith.constant 0 : i32
    %c0_i32_0 = arith.constant 0 : i32
    return %arg0, %c0_i32 : i32, i32
  }
  func.func @transform_2(%arg0: i32, %arg1: i32) -> (i32, i32) {
    %c0_i32 = arith.constant 0 : i32
    %c0_i32_0 = arith.constant 0 : i32
    return %arg1, %c0_i32 : i32, i32
  }
  func.func @transform_3(%arg0: i32, %arg1: i32) -> (i32, i32) {
    %c0_i32 = arith.constant 0 : i32
    return %arg1, %arg0 : i32, i32
  }
}

</mosaic_0001>

<bundles_post_ra>
// kernel: tpu_custom_call.1
= control target key start
LH: loop header
LB: loop body
LE: loop exit
PB: predicated region body
PF: predicated region fallthrough
CT: control target
= control target key end

     0   :  { %8 = vsyncpa [#allocation3], 0  ;;  %s934_s0 = inlined_call_operand.vmem [shape: bf16[32,32], index: 0, kind: input, shape index: {}]   ;;  %s935_s1 = inlined_call_operand.vmem [shape: bf16[256,32], index: 1, kind: input, shape index: {}]   ;;  %s936_s2 = inlined_call_operand.vmem [shape: s32[32,1], index: 2, kind: input, shape index: {}]   ;;  %s937_s3 = inlined_call_operand.hbm [shape: f32[32,256], index: 3, kind: output, shape index: {}]  }
   0x1   :  { %10 = vsyncpa [#allocation3 + $0x1], 0  ;;  %s784_s12 = smov 0   ;;  %s786_s13 = smov 0  }
   0x2   :  { %s788_s14 = smov 0   ;;  %s790_s15 = smov 0  }
   0x3   :  { %s792_s16 = smov 0   ;;  %s794_s17 = smov 0  }
   0x4   :  { %s796_s18 = smov 0   ;;  %s798_s19 = smov 0  }
   0x5 LB: > { %s516_s20 = sadd.s32 4294967295, %s758_s19   ;;  %s517_s21 = sadd.s32 4294967294, %s758_s19   ;;  %s758_s19 = sphi %s798_s19, %s16_s19   ;;  %s754_s18 = sphi %s796_s18, %s946_s18   ;;  %s750_s17 = sphi %s794_s17, %s945_s17   ;;  %s746_s16 = sphi %s792_s16, %s944_s16   ;;  %s742_s15 = sphi %s790_s15, %s943_s15   ;;  %s738_s14 = sphi %s788_s14, %s942_s14   ;;  %s734_s13 = sphi %s786_s13, %s941_s13   ;;  %s730_s12 = sphi %s784_s12, %s940_s12  }
   0x6   : > { %s25_s22 = sadd.s32 1, %s750_s17  ;;  %s28_s23 = sadd.s32 1, %s754_s18 }
   0x7   : > { %p26_p0 = scmp.ge.s32.totalorder %s25_s22, 2  ;;  %p125_p1 = scmp.ne.s32.totalorder %s738_s14, %s734_s13 }
   0x8   : > { %p126_p2 = scmp.eq.s32.totalorder %s516_s20, 3  ;;  %p131_p5 = scmp.ne.s32.totalorder %s734_s13, %s730_s12 }
   0x9   : > { %s948_s22 = smov (%p26_p0, %s25_s22), 0  ;;  %s950_s23 = smov (!%p26_p0, %s28_s23), %s754_s18 }
   0xa   : > { %s110_s24 = ssub.s32 %s750_s17, %s948_s22  ;;  %p835_p3 = por %p126_p2, %p125_p1 }
   0xb   : > { %p30_p4 = scmp.ge.s32.totalorder %s950_s23, 2  ;;  %p132_p6 = scmp.eq.s32.totalorder %s517_s21, 3 }
   0xc   : > { %p520_p7 = scmp.ge.s32.totalorder %s758_s19, 1  ;;  %p177_p9 = scmp.lt.s32.totalorder %s758_s19, 5 }
   0xd   : > { %s952_s23 = smov (%p30_p4, %s950_s23), 0  ;;  %p844_p8 = por %p132_p6, %p131_p5 }
   0xe   : > { %s111_s27 = ssub.s32 %s754_s18, %s952_s23  ;;  %s115_s28 = sadd.s32 1, %s738_s14 }
   0xf   : > { %s112_s29 = sor.u32 %s111_s27, %s110_s24  ;;  %p178_p10 = pnand %p520_p7, %p177_p9 }
  0x10   : > { %p113_p11 = scmp.eq.s32.totalorder %s112_s29, 0  ;;  %s524_s4 = sshll.u32 (!%p178_p10), %s746_s16, 4 }
  0x11   : > { %181 = sbr.rel (%p178_p10) target bundleno = 264 (0x108), region = 32  ;;  %p218_p12 = scmp.lt.s32.totalorder (!%p178_p10), %s524_s4, 31 }
  0x12   : > { %s853_s30 = scalar_select %p113_p11, %s738_s14, %s115_s28  }
  0x13   : > { %s522_s9 = sshll.u32 (!%p178_p10), %s742_s15, 1  ;;  %s567_s24 = sshll.u32 (!%p178_p10), %s746_s16, 7 }
  0x14   : > { %p212_p13 = scmp.lt.s32.totalorder (!%p178_p10), %s522_s9, 3  ;;  %s208_s6 = sand.u32 (!%p178_p10), 1, %s734_s13  }
  0x16   : > { %s954_s4 = smov (!%p218_p12, %s524_s4), 31  ;;  %vm293_vm0 = vcmask 261120   ;;  %s956_s9 = smov (!%p212_p13, %s522_s9), 3  ;;  %v382_v11 = vstv %s567_s24  ;;  %v760_v12 = vmov 0   ;;  %v377_v38 = vlaneseq }
  0x17   : > { %s525_s5 = sshll.u32 %s954_s4, 2  ;;  %s527_s10 = sshll.u32 %s956_s9, 3  ;;  %659 = vset.pattern.permute.xlu0 %v760_v12 }
  0x18   : > { %s859_s8 = scalar_lea.vmem %s935_s1, %s525_s5  ;;  %s227_s21 = scalar_lea.vmem %s936_s2, %s527_s10  ;;  %v378_v44 = vand.u32 127, %v377_v38 }
  0x19   : > { %v582_v0 = vld [vmem:[%s859_s8 + $0x38] sm:$0xff]  ;;  %v581_v2 = vld [vmem:[%s859_s8 + $0x30] sm:$0xff]  ;;  %v580_v4 = vld [vmem:[%s859_s8 + $0x28] sm:$0xff]  ;;  %s523_s27 = sshll.u32 %s956_s9, 2  ;;  %s583_s5 = sshll.u32 %s742_s15, 2 }
  0x1a   : > { %v319_v1 = vsel %vm293_vm0, %v582_v0, 0  ;;  %v316_v3 = vsel %vm293_vm0, %v581_v2, 0  ;;  %v313_v5 = vsel %vm293_vm0, %v580_v4, 0  ;;  %v579_v6 = vld [vmem:[%s859_s8 + $0x20] sm:$0xff]  ;;  %v578_v8 = vld [vmem:[%s859_s8 + $0x18] sm:$0xff]  ;;  %v577_v14 = vld [vmem:[%s859_s8 + $0x10] sm:$0xff]  ;;  %s215_s4 = scalar_lea.vmem %s934_s0, %s523_s27  ;;  %s411_s7 = sadd.s32 %s746_s16, %s583_s5 }
  0x1b   : > { %321 = vmatpush.bf16.xpose.msra.mxu0 %v319_v1  ;;  %v310_v7 = vsel %vm293_vm0, %v579_v6, 0  ;;  %v307_v9 = vsel %vm293_vm0, %v578_v8, 0  ;;  %v379_v10 = vld [vmem:[%s227_s21] sm:$0xff]  ;;  %v380_v15 = vld [vmem:[%s227_s21 + $0x8] sm:$0xff]  ;;  %v304_v16 = vsel %vm293_vm0, %v577_v14, 0  ;;  %s571_s9 = sshll.u32 %s411_s7, 3 }
  0x1c   : > { %v383_v13 = vsub.s32 %v379_v10, %v382_v11  ;;  %v384_v17 = vsub.s32 %v380_v15, %v382_v11  ;;  %v576_v18 = vld [vmem:[%s859_s8 + $0x8] sm:$0xff]  ;;  %v575_v20 = vld [vmem:[%s859_s8] sm:$0xff]  ;;  %s521_s8 = sshll.u32 %s208_s6, 4  ;;  %s413_s16 = scalar_lea.hbm %s937_s3, %s571_s9 }
  0x1d   : > { %v301_v19 = vsel %vm293_vm0, %v576_v18, 0  ;;  %v298_v21 = vsel %vm293_vm0, %v575_v20, 0  ;;  %v574_v22 = vld [vmem:[%s215_s4] sm:$0xff]  ;;  %s210_s11 = scalar_lea.vmem [#allocation2], %s521_s8  ;;  %s416_s21 = sshll.u32 %s413_s16, 4  ;;  %s417_s21 = int_to_ptr.hbm [resolvable:$true] %s416_s21 }
  0x1e   : > { %386 = vperm.xlu0 %659, %v383_v13   ;;  %s414_s20 = sshll.u32 %s210_s11, 4  ;;  %s400_s24 = scalar_lea.sflag [#allocation3], %s208_s6  ;;  %s415_s20 = int_to_ptr.vmem [resolvable:$true] %s414_s20 }
  0x1f   : > { %s678_s27 = sshra.s32 %s417_s21, 4  ;;  %s684_s5 = scalar_lea.hbm %s937_s3, 64  ;;  %s679_s27 = int_to_ptr.hbm [resolvable:$true] %s678_s27 }
  0x20   : > { %s680_s28 = scalar_lea.hbm %s679_s27, 16  ;;  %p685_p4 = scmp.lt.s32.totalorder %s679_s27, %s937_s3 }
  0x21   : > { %p681_p0 = scmp.ne.s32.totalorder %s679_s27, %s680_s28  ;;  %p686_p5 = scmp.lt.s32.totalorder %s684_s5, %s680_s28 }
  0x23   : > { %322 = vmatpush.bf16.xpose.msra.mxu0 %v316_v3  ;;  %p682_p1 = pnand %p681_p0, %p835_p3  ;;  %p687_p6 = por %p686_p5, %p685_p4 }
  0x25   : > { %p683_p2 = pneg %p682_p1 }
  0x26   : > { %389 = vperm.xlu0 %659, %v384_v17  }
  0x27   : > { %p688_p7 = pnand %p687_p6, %p683_p2 }
  0x2b   : > { %323 = vmatpush.bf16.xpose.msra.mxu0 %v313_v5 }
  0x33   : > { %324 = vmatpush.bf16.xpose.msra.mxu0 %v310_v7 }
  0x3b   : > { %325 = vmatpush.bf16.xpose.msra.mxu0 %v307_v9 }
  0x43   : > { %326 = vmatpush.bf16.xpose.msra.mxu0 %v304_v16 }
  0x4b   : > { %327 = vmatpush.bf16.xpose.msra.mxu0 %v301_v19 }
  0x53   : > { %328 = vmatpush.bf16.xpose.msra.mxu0 %v298_v21 }
  0x5a   : > { %564 = vmatmul.msk.bf16.vlgmr.msra.gmra.mxu0 %vm293_vm0, %v574_v22 }
  0x90   : > { %v387_v46 = vpop.permute.xlu0 %386 }
  0x91   : > { %vm391_vm3 = vcmp.eq.s32.totalorder %v378_v44, %v387_v46 }
  0x98   : > { %v390_v63 = vpop.permute.xlu0 %389 }
  0x99   : > { %vm392_vm8 = vcmp.eq.s32.totalorder %v378_v44, %v390_v63 }
  0xd7   : > { %v330_v23 = vpop.f32.mrf.mxu0 }
  0xd8   : > { %v335_v24 = vmul.f32 %v330_v23, %v330_v23  ;;  %v365_v48 = vmul.f32 0.87758255, %v330_v23  ;;  %v565_v51 = vadd.f32 -0.23971277, %v330_v23  ;;  %vm371_vm4 = vcmp.gt.f32.partialorder %v330_v23, -0.87758255 }
  0xda   : > { %v337_v25 = vsub.f32 1.0, %v335_v24 }
  0xdc   : > { %v339_v26 = vmax.f32 %v337_v25, 0.0 }
  0xde   : > { %660 = vrsqrt.f32 %v339_v26  ;;  %vm348_vm1 = vcmp.eq.f32.partialorder %v339_v26, inf  ;;  %v351_v42 = vand.u32 2147483648, %v339_v26  ;;  %vm350_vm2 = vcmp.eq.f32.partialorder %v339_v26, 0.0 }
  0xdf   : > { %v332_v27 = vpop.f32.mrf.mxu0 }
  0xe0   : > { %v336_v28 = vmul.f32 %v332_v27, %v332_v27  ;;  %v366_v61 = vmul.f32 0.87758255, %v332_v27  ;;  %v566_v1 = vadd.f32 -0.23971277, %v332_v27  ;;  %vm372_vm7 = vcmp.gt.f32.partialorder %v332_v27, -0.87758255 }
  0xe2   : > { %v338_v29 = vsub.f32 1.0, %v336_v28 }
  0xe4   : > { %v661_v30 = vpop.eup %660  ;;  %v340_v31 = vmax.f32 %v338_v29, 0.0 }
  0xe5   : > { %v342_v32 = vmul.f32 %v661_v30, %v339_v26 }
  0xe6   : > { %662 = vrsqrt.f32 %v340_v31  ;;  %vm360_vm5 = vcmp.eq.f32.partialorder %v340_v31, inf  ;;  %v363_v56 = vand.u32 2147483648, %v340_v31  ;;  %vm362_vm6 = vcmp.eq.f32.partialorder %v340_v31, 0.0 }
  0xe7   : > { %v343_v33 = vmul.f32 %v661_v30, %v342_v32 }
  0xe9   : > { %v344_v34 = vmul.f32 0.5, %v343_v33 }
  0xeb   : > { %v345_v35 = vsub.f32 1.5, %v344_v34 }
  0xec   : > { %v663_v36 = vpop.eup %662 }
  0xed   : > { %v354_v37 = vmul.f32 %v663_v36, %v340_v31  ;;  %v346_v39 = vmul.f32 %v661_v30, %v345_v35 }
  0xef   : > { %v355_v40 = vmul.f32 %v663_v36, %v354_v37  ;;  %v347_v41 = vmul.f32 %v346_v39, %v339_v26 }
  0xf1   : > { %v356_v43 = vmul.f32 0.5, %v355_v40  ;;  %v349_v45 = vsel %vm348_vm1, %v339_v26, %v347_v41 }
  0xf2   : > { %v352_v47 = vsel %vm350_vm2, %v351_v42, %v349_v45 }
  0xf3   : > { %v357_v49 = vsub.f32 1.5, %v356_v43  ;;  %v367_v50 = vmul.f32 0.47942555, %v352_v47 }
  0xf5   : > { %v358_v52 = vmul.f32 %v663_v36, %v357_v49  ;;  %v369_v53 = vsub.f32 %v365_v48, %v367_v50 }
  0xf7   : > { %v359_v54 = vmul.f32 %v358_v52, %v340_v31  ;;  %v375_v55 = vsel %vm371_vm4, %v369_v53, %v565_v51 }
  0xf8   : > { %v393_v57 = vsel %vm391_vm3, %v375_v55, %v330_v23 }
  0xf9   : > { %v361_v58 = vsel %vm360_vm5, %v340_v31, %v359_v54  ;;  %v395_v59 = vmul.f32 30.0, %v393_v57 }
  0xfa   : > { %v364_v60 = vsel %vm362_vm6, %v363_v56, %v361_v58 }
  0xfb   : > { %v368_v62 = vmul.f32 0.47942555, %v364_v60  ;;  %397 = vst [vmem:[%s210_s11] sm:$0xff] %v395_v59 }
  0xfd   : > { %v370_v0 = vsub.f32 %v366_v61, %v368_v62 }
  0xff   : > { %v376_v2 = vsel %vm372_vm7, %v370_v0, %v566_v1 }
 0x100   : > { %v394_v3 = vsel %vm392_vm8, %v376_v2, %v332_v27 }
 0x101   : > { %v396_v4 = vmul.f32 30.0, %v394_v3 }
 0x103   : > { %398 = vst [vmem:[%s210_s11 + $0x8] sm:$0xff] %v396_v4 }
 0x104   : > { %691 = shalt.err (!%p688_p7)
}
 0x105   : > { %s761_s6 = smov 128   ;;  %s762_s9 = smov 256  }
 0x106   : > { %s763_s15 = smov 8  }
 0x107   : > { %584 = dma.vmem_to_hbm [thread:$0]  (%p835_p3), %s415_s20, 256, %s417_s21, %s400_s24, %s761_s6, %s762_s9, %s763_s15  }
 0x108 PF: > { %p590_p9 = scmp.ge.s32.totalorder %s758_s19, 2  ;;  %s431_s10 = sand.u32 1, %s730_s12  }
 0x109   : > { %s432_s16 = scalar_lea.sflag [#allocation3], %s431_s10 }
 0x10a   : > { %p587_p10 = pnand %p590_p9, %p844_p8 }
 0x10c   : > { %p588_p11 = pneg %p587_p10 }
 0x10e   : > { %725 = dma.done.wait (%p588_p11), %s432_s16, 256  }
 0x10f   : > { %727 = vsyncadd (%p588_p11), %s432_s16, 4294967040  ;;  %s16_s19 = sadd.s32 1, %s758_s19   ;;  %s940_s12 = smov %s734_s13 }
 0x110   : > { %p13_p12 = scmp.ge.s32.totalorder %s16_s19, 6   ;;  %s941_s13 = smov %s738_s14 }
 0x111   : > { %s942_s14 = smov %s853_s30  ;;  %s943_s15 = smov %s750_s17 }
 0x112   : > { %s944_s16 = smov %s754_s18  ;;  %s945_s17 = smov %s948_s22 }
 0x113   : > { %s946_s18 = smov %s952_s23  ;;  %15 = sbr.rel (!%p13_p12) target bundleno = 5 (0x5), region = 73 }
 0x118   :  { %438 = vsyncpa [#allocation3], 1 }
 0x119   :  { %440 = vsyncpa [#allocation3 + $0x1], 1 }

</bundles_post_ra>
